<compile_context>
chip_gen: v7x
topology: tpu7x:2x2x1
jax: 0.10.0
libtpu: 0.0.40
codegen_flags: <defaults>
</compile_context>

<pallas_src>
import numpy as np
import jax
import jax.numpy as jnp
from jax.experimental import pallas as pl
from jax.experimental.pallas import tpu as pltpu


def _round_up(x, m):
    return ((x + m - 1) // m) * m


# --------------------------------------------------------------------------
# Kernel
# --------------------------------------------------------------------------
def _make_flr_kernel(classes: int, compute_dtype):
    """logits = x @ W_cat + b ; softmax over classes (or sigmoid if classes==1)."""

    def flr_kernel(x_ref, w_ref, b_ref, o_ref):
        x = x_ref[...]
        if x.dtype != compute_dtype:         # cheap VPU cast in VMEM (normally a no-op)
            x = x.astype(compute_dtype)
        logits = jnp.dot(x, w_ref[...], preferred_element_type=jnp.float32)
        logits = logits + b_ref[...]
        if classes == 1:
            o_ref[...] = jax.nn.sigmoid(logits)
        else:
            m = jnp.max(logits, axis=-1, keepdims=True)
            e = jnp.exp(logits - m)
            s = jnp.sum(e, axis=-1, keepdims=True)
            inv = pl.reciprocal(s, approx=True)   # EUP slot
            inv = inv * (2.0 - s * inv)           # one Newton step -> ~f32 accuracy
            o_ref[...] = e * inv

    return flr_kernel


# --------------------------------------------------------------------------
# Parameter prep (mirrors nn.Linear init + folds the static S gate, once)
# --------------------------------------------------------------------------
def init_flr_params(key, train_feat, nc=4, classes=5):
    """Deterministic init mirroring nn.Linear's U(-1/sqrt(fan_in), 1/sqrt(fan_in))."""
    assert nc in (2, 4) and len(train_feat) == nc
    params = {"W": [], "b": []}
    for f in train_feat:
        key, kw, kb = jax.random.split(key, 3)
        bound = 1.0 / np.sqrt(f)
        # stored as (F, C): transpose of torch's (C, F) weight
        params["W"].append(
            jax.random.uniform(kw, (f, classes), jnp.float32, -bound, bound)
        )
        params["b"].append(
            jax.random.uniform(kb, (classes,), jnp.float32, -bound, bound)
        )
    params["v"] = jnp.zeros((nc, classes), jnp.float32)  # self.v = torch.zeros(nc, classes)
    params["S"] = np.zeros((nc,), np.float32)            # self.S = torch.zeros(nc)
    return params


def prepare_flr_weights(params, nc=4, classes=5, compute_dtype=jnp.bfloat16):
    """Once-per-parameter-set folding of the static S gate.

    Active branches (S[i] truthy) keep their weight rows; gated-off branches
    get zero weight rows and contribute their v[i] row to the folded bias.
    Result: one stacked W_cat (F_total, classes) + one bias row.

    compute_dtype is an accuracy knob: bf16 (default) halves x/W HBM bytes,
    accumulation + softmax stay f32; pass jnp.float32 for bit-tight results.
    """
    S = np.asarray(params["S"])
    w_rows = []
    b_eff = jnp.zeros((classes,), jnp.float32)
    n_active = 0
    for i in range(nc):
        f = int(params["W"][i].shape[0])
        if bool(S[i]):
            n_active += 1
            w_rows.append(params["W"][i].astype(compute_dtype))
            b_eff = b_eff + params["b"][i]
        else:
            w_rows.append(jnp.zeros((f, classes), compute_dtype))
            b_eff = b_eff + params["v"][i]
    return {
        "W_cat": jnp.concatenate(w_rows, axis=0),   # (F_total, classes)
        "b": b_eff.reshape(1, classes),             # f32
        "n_active": n_active,
        "classes": int(classes),
        "compute_dtype": compute_dtype,
    }


# --------------------------------------------------------------------------
# Forward wrapper
# --------------------------------------------------------------------------
def _concat_inputs(x, nc):
    """Matches the torch forward: list of nc tensors -> flatten+concat, else x as-is."""
    if isinstance(x, (list, tuple)) and len(x) == nc:
        xs = [xi.reshape(xi.shape[0], -1) for xi in x]
        return jnp.concatenate(xs, axis=1)
    return x


def _choose_tile_b(B, tile_b_max=1024, min_steps=4):
    """Rows per grid step: aim for >= min_steps steps (v7x megacore) up to tile_b_max."""
    tile = _round_up(max(1, pl.cdiv(B, min_steps)), 8)
    return max(8, min(int(tile_b_max), tile))


def flr_forward(prep, x, nc=4, tile_b_max=1024):
    classes = prep["classes"]
    cdt = prep["compute_dtype"]

    x = _concat_inputs(x, nc)
    B, f_total = int(x.shape[0]), int(x.shape[1])
    assert f_total == int(prep["W_cat"].shape[0])

    if prep["n_active"] == 0:
        # All branches gated off: logits are row-constant -> no kernel launch.
        logits = jnp.broadcast_to(prep["b"], (B, classes))
        if classes == 1:
            return jnp.squeeze(jax.nn.sigmoid(logits), axis=1)
        return jax.nn.softmax(logits, axis=1)

    if x.dtype != cdt:
        # One-time cast; upstream producers should emit compute_dtype directly
        # (under jit this typically fuses with the producer of x).
        x = x.astype(cdt)

    tile_b = _choose_tile_b(B, tile_b_max)
    grid = (pl.cdiv(B, tile_b),)

    itemsize = int(np.dtype(cdt).itemsize)
    cost = pl.CostEstimate(
        flops=2 * B * f_total * classes,
        transcendentals=B * classes,
        bytes_accessed=(B * f_total * itemsize          # x
                        + f_total * classes * itemsize  # W_cat (resident)
                        + classes * 4                   # bias
                        + B * classes * 4),             # narrow f32 output
    )

    out = pl.pallas_call(
        _make_flr_kernel(classes, cdt),
        out_shape=jax.ShapeDtypeStruct((B, classes), jnp.float32),
        grid=grid,
        in_specs=[
            pl.BlockSpec((tile_b, f_total), lambda g: (g, 0)),    # x: batch-tiled
            pl.BlockSpec((f_total, classes), lambda g: (0, 0)),   # W_cat: resident
            pl.BlockSpec((1, classes), lambda g: (0, 0)),         # bias: resident
        ],
        out_specs=pl.BlockSpec((tile_b, classes), lambda g: (g, 0)),
        compiler_params=pltpu.CompilerParams(
            dimension_semantics=("parallel",)),
        cost_estimate=cost,
    )(x, prep["W_cat"], prep["b"])

    if classes == 1:
        out = jnp.squeeze(out, axis=1)  # torch.squeeze(x, dim=1)
    return out


# --------------------------------------------------------------------------
# Pure-JAX reference mirroring the PyTorch forward branch-by-branch
# --------------------------------------------------------------------------
def _split_inputs(x, train_feat, nc):
    if isinstance(x, (list, tuple)) and len(x) == nc:
        return [xi.reshape(xi.shape[0], -1) for xi in x]
    edges = np.concatenate([[0], np.cumsum(train_feat)]).astype(int)
    return [x[:, edges[i]:edges[i + 1]] for i in range(nc)]


def flr_reference(params, x, train_feat, nc=4, classes=5):
    xs = _split_inputs(x, train_feat, nc)
    B = xs[0].shape[0]
    S = np.asarray(params["S"])
    logits = jnp.zeros((B, classes), jnp.float32)
    for i in range(nc):
        if bool(S[i]):
            logits = logits + xs[i] @ params["W"][i] + params["b"][i]
        else:
            logits = logits + jnp.broadcast_to(params["v"][i], (B, classes))
    if classes == 1:
        return jnp.squeeze(jax.nn.sigmoid(logits), axis=1)
    return jax.nn.softmax(logits, axis=1)


# --------------------------------------------------------------------------
if __name__ == "__main__":
    nc = 4
    classes = 5
    train_feat = [16, 8, 12, 4]
    f_total = int(sum(train_feat))

    key = jax.random.PRNGKey(0)
    key, kx1, kx2 = jax.random.split(key, 3)
    params = init_flr_params(key, train_feat, nc=nc, classes=classes)
    # Enable some branches so the MXU path is exercised; branch 2 stays gated
    # off and contributes its v[2] row (folded into the bias at prep time).
    params["S"] = np.array([1.0, 1.0, 0.0, 1.0], np.float32)

    # ---- f32 compute (accuracy knob), small batch -> single grid step -----
    prep_f32 = prepare_flr_weights(params, nc, classes, compute_dtype=jnp.float32)
    B = 8
    x = jax.random.normal(kx1, (B, f_total), jnp.float32)
    out = jax.block_until_ready(flr_forward(prep_f32, x, nc=nc))
    ref = flr_reference(params, x, train_feat, nc, classes)
    assert out.shape == (B, classes)
    np.testing.assert_allclose(np.asarray(out), np.asarray(ref), atol=1e-4, rtol=1e-4)
    np.testing.assert_allclose(np.asarray(out).sum(axis=1), np.ones(B), atol=1e-4)

    # ---- f32, ragged batch exercising the cdiv grid (>=2 steps, no pad) ---
    B2 = 50
    x2 = jax.random.normal(kx2, (B2, f_total), jnp.float32)
    out2 = jax.block_until_ready(flr_forward(prep_f32, x2, nc=nc, tile_b_max=16))
    ref2 = flr_reference(params, x2, train_feat, nc, classes)
    assert out2.shape == (B2, classes)
    np.testing.assert_allclose(np.asarray(out2), np.asarray(ref2), atol=1e-4, rtol=1e-4)

    # ---- default bf16 x/W path (halves HBM reads), f32 accumulate/softmax -
    prep_bf16 = prepare_flr_weights(params, nc, classes)   # default bf16
    out3 = jax.block_until_ready(flr_forward(prep_bf16, x, nc=nc))
    np.testing.assert_allclose(np.asarray(out3), np.asarray(ref), atol=5e-2, rtol=5e-2)

    # ---- list-of-tensors input (torch's len(x)==nc branch) ----------------
    xs_list, off = [], 0
    for f in train_feat:
        xs_list.append(x[:, off:off + f]); off += f
    out4 = jax.block_until_ready(flr_forward(prep_f32, xs_list, nc=nc))
    np.testing.assert_allclose(np.asarray(out4), np.asarray(ref), atol=1e-4, rtol=1e-4)

    # ---- all branches gated off (S == 0): wrapper short-circuit -----------
    params_off = dict(params)
    params_off["S"] = np.zeros((nc,), np.float32)
    prep_off = prepare_flr_weights(params_off, nc, classes, compute_dtype=jnp.float32)
    out5 = jax.block_until_ready(flr_forward(prep_off, x, nc=nc))
    ref5 = flr_reference(params_off, x, train_feat, nc, classes)
    np.testing.assert_allclose(np.asarray(out5), np.asarray(ref5), atol=1e-5, rtol=1e-5)

    # ---- classes == 1 sigmoid + squeeze path -------------------------------
    params1 = init_flr_params(jax.random.PRNGKey(3), train_feat, nc=nc, classes=1)
    params1["S"] = np.array([1.0, 0.0, 1.0, 1.0], np.float32)
    prep1 = prepare_flr_weights(params1, nc, 1, compute_dtype=jnp.float32)
    out6 = jax.block_until_ready(flr_forward(prep1, x, nc=nc))
    ref6 = flr_reference(params1, x, train_feat, nc, 1)
    assert out6.shape == (B,)
    np.testing.assert_allclose(np.asarray(out6), np.asarray(ref6), atol=1e-4, rtol=1e-4)

    print("KERNEL_OK")
</pallas_src>

<mosaic_0001>
module attributes {stable_mosaic.version = 11 : i64} {
  func.func @flr_kernel(%arg0: i32, %arg1: memref<8x40xf32, #tpu.memory_space<vmem>>, %arg2: memref<40x5xf32, #tpu.memory_space<vmem>>, %arg3: memref<1x5xf32, #tpu.memory_space<vmem>>, %arg4: memref<8x5xf32, #tpu.memory_space<vmem>>) attributes {dimension_semantics = [#tpu.dimension_semantics<parallel>], iteration_bounds = array<i64: 1>, scalar_prefetch = 0 : i64, scratch_operands = 0 : i64, tpu.core_type = #tpu.core_type<tc>, window_params = [{transform_indices = @transform_0, window_bounds = array<i64: 8, 40>}, {pipeline_mode = #tpu.pipeline_mode<synchronous>, transform_indices = @transform_1, window_bounds = array<i64: 40, 5>}, {pipeline_mode = #tpu.pipeline_mode<synchronous>, transform_indices = @transform_2, window_bounds = array<i64: 1, 5>}, {transform_indices = @transform_3, window_bounds = array<i64: 8, 5>}]} {
    %c0 = arith.constant 0 : index
    %c0_0 = arith.constant 0 : index
    %0 = vector.load %arg1[%c0, %c0_0] : memref<8x40xf32, #tpu.memory_space<vmem>>, vector<8x40xf32>
    %c0_1 = arith.constant 0 : index
    %c0_2 = arith.constant 0 : index
    %1 = vector.load %arg2[%c0_1, %c0_2] : memref<40x5xf32, #tpu.memory_space<vmem>>, vector<40x5xf32>
    %cst = arith.constant dense<0.000000e+00> : vector<8x5xf32>
    %2 = tpu.matmul %0, %1, %cst {dimension_numbers = #tpu.dot_dimension_numbers<[1], [0], [0], [1], [0, 0, 1, 1], [], []>} : vector<8x40xf32>, vector<40x5xf32>, vector<8x5xf32> -> vector<8x5xf32>
    %c0_3 = arith.constant 0 : index
    %c0_4 = arith.constant 0 : index
    %3 = vector.load %arg3[%c0_3, %c0_4] : memref<1x5xf32, #tpu.memory_space<vmem>>, vector<1x5xf32>
    %4 = vector.broadcast %3 : vector<1x5xf32> to vector<8x5xf32>
    %5 = arith.addf %2, %4 : vector<8x5xf32>
    %cst_5 = arith.constant dense<0xFF800000> : vector<8xf32>
    %6 = vector.multi_reduction <maximumf>, %5, %cst_5 [1] : vector<8x5xf32> to vector<8xf32>
    %7 = vector.shape_cast %6 : vector<8xf32> to vector<8x1xf32>
    %8 = vector.broadcast %7 : vector<8x1xf32> to vector<8x5xf32>
    %9 = arith.subf %5, %8 : vector<8x5xf32>
    %10 = math.exp %9 : vector<8x5xf32>
    %cst_6 = arith.constant dense<0.000000e+00> : vector<8xf32>
    %11 = vector.multi_reduction <add>, %10, %cst_6 [1] : vector<8x5xf32> to vector<8xf32>
    %12 = vector.shape_cast %11 : vector<8xf32> to vector<8x1xf32>
    %13 = tpu.reciprocal %12 {approx = true} : vector<8x1xf32> -> vector<8x1xf32>
    %14 = arith.mulf %12, %13 : vector<8x1xf32>
    %cst_7 = arith.constant 2.000000e+00 : f32
    %15 = vector.broadcast %cst_7 : f32 to vector<8x1xf32>
    %16 = arith.subf %15, %14 : vector<8x1xf32>
    %17 = arith.mulf %13, %16 : vector<8x1xf32>
    %18 = vector.broadcast %17 : vector<8x1xf32> to vector<8x5xf32>
    %19 = arith.mulf %10, %18 : vector<8x5xf32>
    %c0_8 = arith.constant 0 : index
    %c0_9 = arith.constant 0 : index
    %20 = vector.load %arg4[%c0_8, %c0_9] : memref<8x5xf32, #tpu.memory_space<vmem>>, vector<8x5xf32>
    tpu.vector_store %arg4[%c0_8, %c0_9], %19 {strides = array<i32>} : memref<8x5xf32, #tpu.memory_space<vmem>>, vector<8x5xf32>,
    return
  }
  func.func @transform_0(%arg0: i32) -> (i32, i32) {
    %c0_i32 = arith.constant 0 : i32
    %c0_i32_0 = arith.constant 0 : i32
    return %arg0, %c0_i32 : i32, i32
  }
  func.func @transform_1(%arg0: i32) -> (i32, i32) {
    %c0_i32 = arith.constant 0 : i32
    %c0_i32_0 = arith.constant 0 : i32
    %c0_i32_1 = arith.constant 0 : i32
    return %c0_i32, %c0_i32_0 : i32, i32
  }
  func.func @transform_2(%arg0: i32) -> (i32, i32) {
    %c0_i32 = arith.constant 0 : i32
    %c0_i32_0 = arith.constant 0 : i32
    %c0_i32_1 = arith.constant 0 : i32
    return %c0_i32, %c0_i32_0 : i32, i32
  }
  func.func @transform_3(%arg0: i32) -> (i32, i32) {
    %c0_i32 = arith.constant 0 : i32
    %c0_i32_0 = arith.constant 0 : i32
    return %arg0, %c0_i32 : i32, i32
  }
}

</mosaic_0001>

<bundles_post_ra>
// kernel: tpu_custom_call.1
= control target key start
LH: loop header
LB: loop body
LE: loop exit
PB: predicated region body
PF: predicated region fallthrough
CT: control target
= control target key end

     0   :  { %v191_v3 = vmov 0.0|0.0   ;;  %vm192_vm0 = vmmov 0   ;;  %v193_v6 = vmov 0.0   ;;  %s251_s0 = inlined_call_operand.vmem [shape: f32[8,40], index: 0, kind: input, shape index: {}]   ;;  %s252_s1 = inlined_call_operand.vmem [shape: f32[40,5], index: 1, kind: input, shape index: {}]   ;;  %s253_s2 = inlined_call_operand.vmem [shape: f32[1,5], index: 2, kind: input, shape index: {}]   ;;  %s254_s3 = inlined_call_operand.hbm [shape: f32[8,5], index: 3, kind: output, shape index: {}]  }
   0x1   :  { %v16_v0 = vld [vmem:[%s252_s1] sm:$0xff]  ;;  %v17_v1 = vld [vmem:[%s252_s1 + $0x8] sm:$0xff]  ;;  %v18_v2 = vld [vmem:[%s252_s1 + $0x10] sm:$0xff]  ;;  %153 = vmatprep.subr.bf16.mxu0 %v191_v3  ;;  %150 = vmatprep.mubr.msk.f32.mxu0 %vm192_vm0, %v193_v6 }
   0x2   :  { %v154_v4 = vpack.c.bf16 %v17_v1, %v16_v0  ;;  %v19_v5 = vld [vmem:[%s252_s1 + $0x18] sm:$0xff] }
   0x3   :  { %8 = vsyncpa [#allocation3], 0  ;;  %v157_v7 = vpack.c.bf16 %v19_v5, %v18_v2  ;;  %v20_v8 = vld [vmem:[%s252_s1 + $0x20] sm:$0xff]  ;;  %vm28_vm1 = vcmask 326656   ;;  %vm102_vm2 = vcmask 39936  }
   0x4   :  { %155 = vmatpush3.bf16.msra.mxu0 %v154_v4  ;;  %v15_v9 = vld [vmem:[%s251_s0] sm:$0xff]  ;;  %s194_s0 = smov [#allocation2]  }
   0x5   :  { %156 = vmatprep.subr.bf16.mxu0 %v191_v3  ;;  %v132_v10 = vld [vmem:[%s253_s2] ss:$0 sm:$0xff]  ;;  %s124_s1 = sshll.u32 %s194_s0, 4  ;;  %s125_s1 = int_to_ptr.vmem [resolvable:$true] %s124_s1 }
   0x6   :  { %s167_s2 = scalar_lea.vmem %s125_s1, 128  ;;  %p172_p1 = scmp.lt.s32.totalorder %s125_s1, %s125_s1 }
   0x7   :  { %p168_p0 = scmp.ne.s32.totalorder %s125_s1, %s167_s2  ;;  %p173_p2 = scmp.lt.s32.totalorder %s167_s2, %s167_s2 }
   0x8   :  { %158 = vmatpush3.bf16.msra.mxu0 %v157_v7 }
   0x9   :  { %148 = vmatprep.subr.mxu0 %v193_v6  ;;  %p174_p3 = por %p173_p2, %p172_p1 }
   0xb   :  { %p175_p4 = pnand %p174_p3, %p168_p0 }
   0xc   :  { %149 = vmatpush3.msra.mxu0 %v20_v8 }
   0xd   :  { %151 = vmatmul.mubr.msk.f32.vlgmr.msra.gmra.mrb[0].mxu0 %vm28_vm1, %v15_v9 }
  0xe0   :  { %v98_v11 = vpop.f32.mrb[0].mxu0 }
  0xe1   :  { %v99_v12 = vadd.f32 %v132_v10, %v98_v11  ;;  %v152_v13 = vpop.f32.mrb[1].mxu0 }
  0xe3   :  { %v103_v14 = vsel %vm102_vm2, %v99_v12, -inf }
  0xe4   :  { %104 = vmax.xlane.f32.xlu0 %v103_v14 }
 0x171   :  { %v105_v15 = vpop.xlane.xlu0 %104 }
 0x172   :  { %v106_v16 = vsub.f32 %v99_v12, %v105_v15 }
 0x174   :  { %v107_v17 = vmul.f32 1.442695, %v106_v16 }
 0x176   :  { %163 = vpow2.f32 %v107_v17 }
 0x180   :  { %v164_v18 = vpop.eup %163 }
 0x181   :  { %v109_v19 = vsel %vm102_vm2, %v164_v18, 0.0 }
 0x182   :  { %110 = vadd.xlane.f32.xlu0 %v109_v19 }
 0x20f   :  { %v111_v20 = vpop.xlane.xlu0 %110 }
 0x210   :  { %165 = vrcp.f32 %v111_v20 }
 0x21a   :  { %v166_v21 = vpop.eup %165 }
 0x21b   :  { %v113_v22 = vmul.f32 %v166_v21, %v111_v20 }
 0x21d   :  { %v114_v23 = vsub.f32 2.0, %v113_v22 }
 0x21f   :  { %v115_v24 = vmul.f32 %v166_v21, %v114_v23 }
 0x221   :  { %v116_v25 = vmul.f32 %v164_v18, %v115_v24 }
 0x223   :  { %117 = vst.msk [vmem:[#allocation2] sm:$0xff] %vm102_vm2, %v116_v25 }
 0x224   :  { %178 = shalt.err (!%p175_p4)
}
 0x225   :  { %s179_s28 = scalar_lea.hbm %s254_s3, 128 }
 0x226   :  { %p180_p5 = scmp.ne.s32.totalorder %s254_s3, %s179_s28  ;;  %p183_p6 = scmp.lt.u32.totalorder %s179_s28, %s254_s3 }
 0x228   :  { %p185_p7 = pnand %p183_p6, %p180_p5 }
 0x22a   :  { %188 = shalt.err (!%p185_p7)
}
 0x22b   :  { %127 = dma.vmem_to_hbm [thread:$0]  %s125_s1, 128, %s254_s3, [#allocation3]  }
 0x22c   :  { %189 = dma.done.wait [#allocation3], 128  }
 0x22d   :  { %190 = vsyncadd [#allocation3], 4294967168 }
 0x22e   :  { %131 = vsyncpa [#allocation3], 1 }

</bundles_post_ra>
